<compile_context>
chip_gen: v7x
topology: tpu7x:2x2x1
jax: 0.10.0
libtpu: 0.0.40
codegen_flags: <defaults>
</compile_context>

<pallas_src>
import functools

import jax
import jax.numpy as jnp
from jax.experimental import pallas as pl
from jax.experimental.pallas import tpu as pltpu


# ---------------------------------------------------------------------------
# Kernels
# ---------------------------------------------------------------------------
def _native_kernel(x_ref, a_ref, o_ref, *, precision):
    # x_ref : (Nb, Ct, V, Lt)  native layout, lane-dense last dim (Lt % 128 == 0)
    # a_ref : (Nb, W, V)
    # o_ref : (Nb, Ct, W, Lt)  written directly in the module's output layout
    nb, ct, v, lt = x_ref.shape
    w = a_ref.shape[1]
    # Broadcast A over the channel tile (cheap, VMEM-resident) and collapse the
    # (n, c) batch dims so the contraction is one batched (W,V)x(V,Lt) matmul.
    a = jnp.broadcast_to(a_ref[...][:, None, :, :], (nb, ct, w, v))
    a = a.reshape(nb * ct, w, v)
    x = x_ref[...].reshape(nb * ct, v, lt)
    out = jnp.einsum(
        "bwv,bvl->bwl",
        a,
        x,
        preferred_element_type=jnp.float32,
        precision=precision,
    )
    o_ref[...] = out.reshape(nb, ct, w, lt).astype(o_ref.dtype)


def _fold_kernel(x_ref, a_ref, o_ref, *, precision):
    # x_ref : (Nb, V, Mt)  lanes = folded (c, l), Mt % 128 == 0
    # a_ref : (Nb, W, V)
    # o_ref : (Nb, W, Mt)
    o_ref[...] = jnp.einsum(
        "nwv,nvm->nwm",
        a_ref[...],
        x_ref[...],
        preferred_element_type=jnp.float32,
        precision=precision,
    ).astype(o_ref.dtype)


# ---------------------------------------------------------------------------
# Tiling helpers
# ---------------------------------------------------------------------------
def _round_up(a, b):
    return (a + b - 1) // b * b


def _vmem_budget():
    """Generation-aware (block budget, scoped vmem limit) in bytes."""
    cap = None
    try:
        cap = getattr(pltpu.get_tpu_info(), "vmem_capacity_bytes", None)
    except Exception:
        cap = None
    if not cap:
        cap = 64 * 1024 * 1024  # conservative default (v7x: 64 MiB per TC)
    budget = int(0.375 * cap)                              # ~24 MiB v7x / ~48 MiB v5e,v6e
    vmem_limit = min(int(0.70 * cap), 100 * 1024 * 1024)   # ~45 MiB v7x / ~90 MiB v5e,v6e
    return budget, vmem_limit


def _choose_native_tiles(N, C, V, W, Lp, itemsize, budget):
    def footprint(nb, ct, lt):
        # double-buffered pipeline blocks + rough in-kernel f32 temporaries
        blk = 2 * itemsize * nb * (ct * V * lt + W * V + ct * W * lt)
        tmp = 4 * nb * ct * (W * V + W * lt + V * lt)
        return blk + tmp

    Lt = 128
    lt = 128
    cap = min(Lp, 4096)
    while lt <= cap and footprint(1, 1, lt) <= budget:
        Lt = lt
        lt += 128

    Ct = 1
    for ct in range(2, C + 1):
        if footprint(1, ct, Lt) <= budget:
            Ct = ct
        else:
            break

    Nb = 1
    for nb in range(2, N + 1):
        if footprint(nb, Ct, Lt) <= budget:
            Nb = nb
        else:
            break
    return Nb, Ct, Lt


def _choose_fold_tiles(N, V, W, Mp, itemsize, budget):
    def footprint(nb, mt):
        blk = 2 * itemsize * nb * (V * mt + W * V + W * mt)
        tmp = 4 * nb * W * mt
        return blk + tmp

    Mt = 128
    mt = 128
    cap = min(Mp, 32768)
    while mt <= cap and footprint(1, mt) <= budget:
        Mt = mt
        mt += 128

    Nb = 1
    for nb in range(2, N + 1):
        if footprint(nb, Mt) <= budget:
            Nb = nb
        else:
            break
    return Nb, Mt


def _ensure_multicore_native(N, C, Lp, Nb, Ct, Lt):
    # v7x has 2 TensorCores and only shards "parallel" grid axes; make sure the
    # grid has >= 2 program instances whenever the problem allows it (cost on
    # single-TC v5e/v6e: one extra ~0.35 us grid step — negligible).
    if pl.cdiv(N, Nb) * pl.cdiv(C, Ct) * pl.cdiv(Lp, Lt) >= 2:
        return Nb, Ct, Lt
    if N >= 2:
        Nb = (N + 1) // 2
    elif C >= 2:
        Ct = (C + 1) // 2
    elif Lp >= 256:
        Lt = max(128, _round_up(Lp // 2, 128))
    return Nb, Ct, Lt


def _ensure_multicore_fold(N, Mp, Nb, Mt):
    if pl.cdiv(N, Nb) * pl.cdiv(Mp, Mt) >= 2:
        return Nb, Mt
    if N >= 2:
        Nb = (N + 1) // 2
    elif Mp >= 256:
        Mt = max(128, _round_up(Mp // 2, 128))
    return Nb, Mt


# ---------------------------------------------------------------------------
# Paths
# ---------------------------------------------------------------------------
def _native_path(x, A, N, C, V, W, L, itemsize, precision, budget, vmem_limit,
                 out_dtype):
    Lp = _round_up(L, 128)
    Nb, Ct, Lt = _choose_native_tiles(N, C, V, W, Lp, itemsize, budget)
    Nb, Ct, Lt = _ensure_multicore_native(N, C, Lp, Nb, Ct, Lt)
    grid = (pl.cdiv(N, Nb), pl.cdiv(C, Ct), pl.cdiv(L, Lt))

    cost = pl.CostEstimate(
        flops=2 * N * C * W * V * L,
        bytes_accessed=itemsize * (N * C * V * L + N * W * V)
        + jnp.dtype(out_dtype).itemsize * N * C * W * L,
        transcendentals=0,
    )

    return pl.pallas_call(
        functools.partial(_native_kernel, precision=precision),
        out_shape=jax.ShapeDtypeStruct((N, C, W, L), out_dtype),
        grid_spec=pltpu.PrefetchScalarGridSpec(
            num_scalar_prefetch=0,
            grid=grid,
            in_specs=[
                pl.BlockSpec((Nb, Ct, V, Lt), lambda n, c, l: (n, c, 0, l)),
                pl.BlockSpec((Nb, W, V), lambda n, c, l: (n, 0, 0)),
            ],
            out_specs=pl.BlockSpec((Nb, Ct, W, Lt), lambda n, c, l: (n, c, 0, l)),
        ),
        compiler_params=pltpu.CompilerParams(
            dimension_semantics=("parallel", "parallel", "parallel"),
            vmem_limit_bytes=vmem_limit,
        ),
        cost_estimate=cost,
    )(x, A)


def _fold_path(x, A, N, C, V, W, L, itemsize, precision, budget, vmem_limit,
               out_dtype):
    # Small-L fallback: fold (c, l) into one lane-dense axis M = C*L, pad to 128.
    M = C * L
    Mp = _round_up(M, 128)
    x_r = jnp.transpose(x, (0, 2, 1, 3)).reshape(N, V, M)
    if Mp != M:
        x_r = jnp.pad(x_r, ((0, 0), (0, 0), (0, Mp - M)))

    Nb, Mt = _choose_fold_tiles(N, V, W, Mp, itemsize, budget)
    Nb, Mt = _ensure_multicore_fold(N, Mp, Nb, Mt)
    grid = (pl.cdiv(N, Nb), pl.cdiv(Mp, Mt))

    cost = pl.CostEstimate(
        flops=2 * N * W * V * Mp,
        bytes_accessed=itemsize * (N * V * Mp + N * W * V)
        + jnp.dtype(out_dtype).itemsize * N * W * Mp,
        transcendentals=0,
    )

    out = pl.pallas_call(
        functools.partial(_fold_kernel, precision=precision),
        out_shape=jax.ShapeDtypeStruct((N, W, Mp), out_dtype),
        grid_spec=pltpu.PrefetchScalarGridSpec(
            num_scalar_prefetch=0,
            grid=grid,
            in_specs=[
                pl.BlockSpec((Nb, V, Mt), lambda n, m: (n, 0, m)),
                pl.BlockSpec((Nb, W, V), lambda n, m: (n, 0, 0)),
            ],
            out_specs=pl.BlockSpec((Nb, W, Mt), lambda n, m: (n, 0, m)),
        ),
        compiler_params=pltpu.CompilerParams(
            dimension_semantics=("parallel", "parallel"),
            vmem_limit_bytes=vmem_limit,
        ),
        cost_estimate=cost,
    )(x_r, A)

    out = out[:, :, :M].reshape(N, W, C, L)
    return jnp.transpose(out, (0, 2, 1, 3))


# ---------------------------------------------------------------------------
# Public wrapper
# ---------------------------------------------------------------------------
def batch_a_nconv(x, A, *, compute_dtype=None):
    """Pallas implementation of torch.einsum('ncvl,nwv->ncwl', (x, A)).

    compute_dtype: optionally cast inputs (e.g. jnp.bfloat16) before the kernel;
      MXU accumulation stays f32.  Recommended for production shapes — the
      kernel is HBM-bandwidth bound, so bf16 inputs roughly halve bytes moved.
    """
    N, C, V, L = x.shape
    N2, W, V2 = A.shape
    assert N == N2 and V == V2, "shape mismatch between x and A"

    if compute_dtype is not None:
        x = x.astype(compute_dtype)
        A = A.astype(compute_dtype)
    out_dtype = x.dtype
    itemsize = jnp.dtype(x.dtype).itemsize

    # Exact-f32 MXU contraction for f32 inputs (default MXU pass is reduced
    # precision); bf16 inputs take the default single pass.
    precision = (
        jax.lax.Precision.HIGHEST if jnp.dtype(x.dtype) == jnp.float32 else None
    )

    budget, vmem_limit = _vmem_budget()

    if L >= 128:  # native layout keeps lanes dense; no extra HBM round-trips
        return _native_path(x, A, N, C, V, W, L, itemsize, precision,
                            budget, vmem_limit, out_dtype)
    return _fold_path(x, A, N, C, V, W, L, itemsize, precision,
                      budget, vmem_limit, out_dtype)


def _reference(x, A):
    return jnp.einsum("ncvl,nwv->ncwl", x, A,
                      precision=jax.lax.Precision.HIGHEST)


if __name__ == "__main__":
    key = jax.random.PRNGKey(0)
    k1, k2, k3, k4 = jax.random.split(key, 4)

    # --- fold path (small L): N=2, C=4, V=16, L=16, W=8 ---
    N, C, V, L, W = 2, 4, 16, 16, 8
    x1 = jax.random.normal(k1, (N, C, V, L), dtype=jnp.float32)
    A1 = jax.random.normal(k2, (N, W, V), dtype=jnp.float32)
    out1 = jax.block_until_ready(batch_a_nconv(x1, A1))
    ref1 = _reference(x1, A1)
    assert out1.shape == (N, C, W, L)
    assert jnp.allclose(out1, ref1, atol=1e-4, rtol=1e-4), "fold path mismatch"

    # --- native-layout path (L >= 128): N=2, C=3, V=16, L=128, W=8 ---
    Nn, Cn, Vn, Ln, Wn = 2, 3, 16, 128, 8
    x2 = jax.random.normal(k3, (Nn, Cn, Vn, Ln), dtype=jnp.float32)
    A2 = jax.random.normal(k4, (Nn, Wn, Vn), dtype=jnp.float32)
    out2 = jax.block_until_ready(batch_a_nconv(x2, A2))
    ref2 = _reference(x2, A2)
    assert out2.shape == (Nn, Cn, Wn, Ln)
    assert jnp.allclose(out2, ref2, atol=1e-4, rtol=1e-4), "native path mismatch"

    # --- optional bf16-input path (production default for mem-bound shapes) ---
    out_bf16 = jax.block_until_ready(
        batch_a_nconv(x2, A2, compute_dtype=jnp.bfloat16)
    )
    assert out_bf16.shape == (Nn, Cn, Wn, Ln)
    assert jnp.allclose(out_bf16.astype(jnp.float32), ref2, atol=0.3, rtol=0.1), (
        "bf16 path mismatch"
    )

    print("KERNEL_OK")
</pallas_src>

<mosaic_0001>
module attributes {stable_mosaic.version = 11 : i64} {
  func.func @_fold_kernel(%arg0: i32, %arg1: i32, %arg2: memref<1x16x128xf32, #tpu.memory_space<vmem>>, %arg3: memref<1x8x16xf32, #tpu.memory_space<vmem>>, %arg4: memref<1x8x128xf32, #tpu.memory_space<vmem>>) attributes {dimension_semantics = [#tpu.dimension_semantics<parallel>, #tpu.dimension_semantics<parallel>], iteration_bounds = array<i64: 2, 1>, scalar_prefetch = 0 : i64, scratch_operands = 0 : i64, tpu.core_type = #tpu.core_type<tc>, window_params = [{transform_indices = @transform_0, window_bounds = array<i64: 1, 16, 128>}, {transform_indices = @transform_1, window_bounds = array<i64: 1, 8, 16>}, {transform_indices = @transform_2, window_bounds = array<i64: 1, 8, 128>}]} {
    %c0 = arith.constant 0 : index
    %c0_0 = arith.constant 0 : index
    %c0_1 = arith.constant 0 : index
    %0 = vector.load %arg3[%c0, %c0_0, %c0_1] : memref<1x8x16xf32, #tpu.memory_space<vmem>>, vector<1x8x16xf32>
    %c0_2 = arith.constant 0 : index
    %c0_3 = arith.constant 0 : index
    %c0_4 = arith.constant 0 : index
    %1 = vector.load %arg2[%c0_2, %c0_3, %c0_4] : memref<1x16x128xf32, #tpu.memory_space<vmem>>, vector<1x16x128xf32>
    "tpu.trace_start"() <{level = 10 : i32, message = "nwv,nvm->nwm"}> : () -> ()
    %cst = arith.constant dense<0.000000e+00> : vector<1x8x128xf32>
    %2 = tpu.matmul %0, %1, %cst {dimension_numbers = #tpu.dot_dimension_numbers<[2], [1], [1], [2], [0, 0, 0, 1, 1, 2], [0], [0]>, precision = #tpu.contract_precision<fp32>} : vector<1x8x16xf32>, vector<1x16x128xf32>, vector<1x8x128xf32> -> vector<1x8x128xf32>
    "tpu.trace_stop"() : () -> ()
    %c0_5 = arith.constant 0 : index
    %c0_6 = arith.constant 0 : index
    %c0_7 = arith.constant 0 : index
    %3 = vector.load %arg4[%c0_5, %c0_6, %c0_7] : memref<1x8x128xf32, #tpu.memory_space<vmem>>, vector<1x8x128xf32>
    tpu.vector_store %arg4[%c0_5, %c0_6, %c0_7], %2 {strides = array<i32>} : memref<1x8x128xf32, #tpu.memory_space<vmem>>, vector<1x8x128xf32>,
    return
  }
  func.func @transform_0(%arg0: i32, %arg1: i32) -> (i32, i32, i32) {
    %c0_i32 = arith.constant 0 : i32
    %c0_i32_0 = arith.constant 0 : i32
    return %arg0, %c0_i32, %arg1 : i32, i32, i32
  }
  func.func @transform_1(%arg0: i32, %arg1: i32) -> (i32, i32, i32) {
    %c0_i32 = arith.constant 0 : i32
    %c0_i32_0 = arith.constant 0 : i32
    %c0_i32_1 = arith.constant 0 : i32
    return %arg0, %c0_i32, %c0_i32_0 : i32, i32, i32
  }
  func.func @transform_2(%arg0: i32, %arg1: i32) -> (i32, i32, i32) {
    %c0_i32 = arith.constant 0 : i32
    %c0_i32_0 = arith.constant 0 : i32
    return %arg0, %c0_i32, %arg1 : i32, i32, i32
  }
}

</mosaic_0001>

<bundles_post_ra>
// kernel: tpu_custom_call.1
= control target key start
LH: loop header
LB: loop body
LE: loop exit
PB: predicated region body
PF: predicated region fallthrough
CT: control target
= control target key end

     0   :  { %7 = vsyncpa [#allocation3], 0  ;;  %s1375_s0 = inlined_call_operand.hbm [shape: f32[2,16,128], index: 0, kind: input, shape index: {}]   ;;  %s1376_s1 = inlined_call_operand.hbm [shape: f32[2,8,16], index: 1, kind: input, shape index: {}]   ;;  %s1377_s2 = inlined_call_operand.hbm [shape: f32[2,8,128], index: 2, kind: output, shape index: {}]  }
   0x1   :  { %9 = vsyncpa [#allocation3 + $0x1], 0 }
   0x2   :  { %10 = vsyncpa [#allocation6], 0 }
   0x3   :  { %12 = vsyncpa [#allocation6 + $0x1], 0 }
   0x4   :  { %13 = vsyncpa [#allocation4], 0 }
   0x5   :  { %15 = vsyncpa [#allocation4 + $0x1], 0  ;;  %s1150_s9 = smov 0   ;;  %s1152_s10 = smov 0  }
   0x6   :  { %s1154_s11 = smov 0   ;;  %s1156_s12 = smov 0  }
   0x7   :  { %s1158_s13 = smov 0   ;;  %s1160_s14 = smov 0  }
   0x8 LB: > { %s802_s15 = sadd.s32 4294967295, %s1125_s14   ;;  %s803_s16 = sadd.s32 4294967294, %s1125_s14   ;;  %s1125_s14 = sphi %s1160_s14, %s21_s14   ;;  %s1121_s13 = sphi %s1158_s13, %s1396_s13   ;;  %s1117_s12 = sphi %s1156_s12, %s1395_s12   ;;  %s1113_s11 = sphi %s1154_s11, %s1394_s11   ;;  %s1109_s10 = sphi %s1152_s10, %s1393_s10   ;;  %s1105_s9 = sphi %s1150_s9, %s1392_s9  }
   0x9   : > { %s33_s17 = sadd.s32 1, %s1121_s13  ;;  %s42_s18 = sadd.s32 1, %s1113_s11 }
   0xa   : > { %p35_p0 = scmp.ge.s32.totalorder %s33_s17, 2  ;;  %p49_p1 = scmp.ne.s32.totalorder %s1113_s11, %s1109_s10 }
   0xb   : > { %p50_p2 = scmp.eq.s32.totalorder %s1125_s14, 0  ;;  %p55_p3 = scmp.ne.s32.totalorder %s1109_s10, %s1105_s9 }
   0xc   : > { %s1398_s17 = smov (%p35_p0, %s33_s17), 0  ;;  %p56_p5 = scmp.eq.s32.totalorder %s802_s15, 0 }
   0xd   : > { %p1191_p4 = por %p50_p2, %p49_p1  ;;  %s37_s20 = ssub.s32 %s1121_s13, %s1398_s17 }
   0xe   : > { %p107_p6 = scmp.eq.s32.totalorder %s802_s15, 1  ;;  %p40_p7 = scmp.eq.s32.totalorder %s37_s20, 0 }
   0xf   : > { %p1197_p8 = por %p56_p5, %p55_p3  ;;  %p113_p10 = scmp.eq.s32.totalorder %s803_s16, 1 }
  0x10   : > { %p1201_p9 = por %p107_p6, %p49_p1  ;;  %p924_p13 = scmp.lt.s32.totalorder %s1125_s14, 2 }
  0x11   : > { %s1381_s21 = scalar_select %p1197_p8, 1, 0 }
  0x12   : > { %s1382_s22 = scalar_select %p1201_p9, 1, 0 }
  0x13   : > { %s1206_s23 = scalar_select %p40_p7, %s1113_s11, %s42_s18  }
  0x14   : > { %p1208_p11 = por %p113_p10, %p55_p3  ;;  %s1215_s25 = sand.u32 1, %s1113_s11  }
  0x15   : > { %s806_s26 = sshll.u32 %s1215_s25, 4  ;;  %s819_s27 = sshll.u32 %s1121_s13, 8 }
  0x16   : > { %s1383_s24 = scalar_select %p1208_p11, 1, 0 }
  0x17   : > { %s1222_s30 = scalar_lea.hbm %s1375_s0, %s819_s27  ;;  %s137_s3 = scalar_lea.vmem [#allocation2], %s806_s26 }
  0x18   : > { %s145_s4 = sshll.u32 %s137_s3, 4  ;;  %p1228_p0 = pnand %p924_p13, %p1191_p4  ;;  %s1224_s4 = int_to_ptr.vmem [resolvable:$true] %s145_s4 }
  0x19   : > { %s134_s6 = scalar_lea.sflag [#allocation3], %s1215_s25  ;;  %s979_s7 = scalar_lea.hbm %s1222_s30, 256 }
  0x1a   : > { %p980_p2 = scmp.ne.s32.totalorder %s1222_s30, %s979_s7  ;;  %p981_p3 = pneg %p1228_p0 }
  0x1b   : > { %s984_s16 = scalar_lea.hbm %s1375_s0, 512  ;;  %p985_p4 = scmp.lt.u32.totalorder %s1222_s30, %s1375_s0 }
  0x1c   : > { %p982_p5 = pnand %p981_p3, %p980_p2  ;;  %p986_p7 = scmp.lt.u32.totalorder %s984_s16, %s979_s7 }
  0x1d   : > { %p988_p13 = scmp.lt.u32.totalorder %s979_s7, %s1222_s30 }
  0x1e   : > { %p983_p6 = pneg %p982_p5  ;;  %p987_p10 = por %p986_p7, %p985_p4 }
  0x20   : > { %p989_p12 = por %p988_p13, %p987_p10 }
  0x22   : > { %p990_p1 = pnand %p989_p12, %p983_p6 }
  0x24   : > { %993 = shalt.err (!%p990_p1)
}
  0x25   : > { %s994_s20 = scalar_lea.vmem %s1224_s4, 256  ;;  %s1127_s26 = smov [#allocation2]  }
  0x26   : > { %p995_p2 = scmp.ne.s32.totalorder %s1224_s4, %s994_s20  ;;  %s999_s27 = sshll.u32 %s1127_s26, 4  ;;  %s1000_s27 = int_to_ptr.vmem [resolvable:$false] %s999_s27 }
  0x27   : > { %s1001_s28 = scalar_lea.vmem %s1000_s27, 512  ;;  %p1002_p9 = scmp.lt.s32.totalorder %s1224_s4, %s1000_s27 }
  0x28   : > { %p997_p5 = pnand %p995_p2, %p981_p3  ;;  %p1003_p4 = scmp.lt.s32.totalorder %s1001_s28, %s994_s20 }
  0x2a   : > { %p998_p11 = pneg %p997_p5  ;;  %p1004_p7 = por %p1003_p4, %p1002_p9 }
  0x2c   : > { %p1005_p10 = pnand %p1004_p7, %p998_p11 }
  0x2e   : > { %1008 = shalt.err (!%p1005_p10)
}
  0x2f   : > { %s1128_s29 = smov 128   ;;  %s1129_s3 = smov 8  }
  0x30   : > { %916 = dma.hbm_to_vmem [thread:$0]  (!%p1228_p0), %s1222_s30, 256, %s1224_s4, %s134_s6, %s1128_s29, %s1128_s29, %s1129_s3  }
  0x31   : > { %p171_p12 = scmp.lt.s32.totalorder %s1125_s14, 3  ;;  %s809_s7 = sshll.u32 %s1215_s25, 3 }
  0x32   : > { %s810_s8 = sshll.u32 %s1121_s13, 7  ;;  %p1385_p9 = scmp.ge.s32.totalorder %s1125_s14, 1 }
  0x33   : > { %s1273_s19 = scalar_lea.hbm %s1376_s1, %s810_s8  ;;  %s159_s20 = scalar_lea.vmem [#allocation5], %s809_s7 }
  0x34   : > { %p1266_p11 = pnand %p1385_p9, %p171_p12  ;;  %s166_s26 = sshll.u32 %s159_s20, 4  ;;  %s167_s26 = int_to_ptr.vmem [resolvable:$true] %s166_s26 }
  0x35   : > { %s156_s30 = scalar_lea.sflag [#allocation6], %s1215_s25  ;;  %s1009_s4 = scalar_lea.hbm %s1273_s19, 128 }
  0x36   : > { %s1386_s15 = scalar_select %p1266_p11, 1, 0 }
  0x37   : > { %p1010_p1 = scmp.ne.s32.totalorder %s1273_s19, %s1009_s4  ;;  %s1014_s28 = scalar_lea.hbm %s1376_s1, 256 }
  0x38   : > { %p1015_p2 = scmp.lt.u32.totalorder %s1273_s19, %s1376_s1  ;;  %p1016_p5 = scmp.lt.u32.totalorder %s1014_s28, %s1009_s4 }
  0x39   : > { %p1012_p6 = pnand %p1010_p1, %p981_p3  ;;  %p1018_p7 = scmp.lt.u32.totalorder %s1009_s4, %s1273_s19 }
  0x3a   : > { %p1017_p4 = por %p1016_p5, %p1015_p2 }
  0x3b   : > { %p1013_p13 = pneg %p1012_p6 }
  0x3c   : > { %p1019_p10 = por %p1018_p7, %p1017_p4 }
  0x3e   : > { %p1020_p12 = pnand %p1019_p10, %p1013_p13 }
  0x40   : > { %1023 = shalt.err (!%p1020_p12)
}
  0x41   : > { %s1024_s25 = scalar_lea.vmem %s167_s26, 128  ;;  %s1130_s7 = smov [#allocation5]  }
  0x42   : > { %p1025_p9 = scmp.ne.s32.totalorder %s167_s26, %s1024_s25  ;;  %s1029_s8 = sshll.u32 %s1130_s7, 4  ;;  %s1030_s8 = int_to_ptr.vmem [resolvable:$false] %s1029_s8 }
  0x43   : > { %s1031_s16 = scalar_lea.vmem %s1030_s8, 256  ;;  %p1032_p8 = scmp.lt.s32.totalorder %s167_s26, %s1030_s8 }
  0x44   : > { %p1027_p1 = pnand %p1025_p9, %p981_p3  ;;  %p1033_p11 = scmp.lt.s32.totalorder %s1031_s16, %s1024_s25 }
  0x46   : > { %p1028_p6 = pneg %p1027_p1  ;;  %p1034_p2 = por %p1033_p11, %p1032_p8 }
  0x48   : > { %p1035_p5 = pnand %p1034_p2, %p1028_p6 }
  0x4a   : > { %1038 = shalt.err (!%p1035_p5)
}
  0x4b   : > { %919 = dma.hbm_to_vmem [thread:$0]  (!%p1228_p0), %s1273_s19, 128, %s167_s26, %s156_s30  }
  0x4c   : > { %p1387_p13 = scmp.ne.s32.totalorder %s1386_s15, 0 }
  0x4d   : > { %s1298_s18 = sand.u32 (!%p1387_p13), 1, %s1109_s10   ;;  %p1388_p3 = scmp.ne.s32.totalorder (!%p1387_p13), %s1381_s21, 0 }
  0x4e   : > { %175 = sbr.rel (%p1387_p13) target bundleno = 346 (0x15a), region = 28  ;;  %s812_s20 = sshll.u32 (!%p1387_p13), %s1298_s18, 4 }
  0x4f   : > { %s178_s4 = scalar_lea.sflag (!%p1387_p13), [#allocation3], %s1298_s18  ;;  %s181_s6 = scalar_lea.vmem (!%p1387_p13), [#allocation2], %s812_s20 }
  0x55   : > { %1092 = dma.done.wait (%p1388_p3), %s178_s4, 256  }
  0x56   : > { %1094 = vsyncadd (%p1388_p3), %s178_s4, 4294967040  ;;  %s813_s5 = sshll.u32 %s1298_s18, 3  ;;  %s187_s15 = scalar_lea.sflag [#allocation6], %s1298_s18 }
  0x57   : > { %s190_s19 = scalar_lea.vmem [#allocation5], %s813_s5 }
  0x58   : > { %1096 = dma.done.wait (%p1388_p3), %s187_s15, 128  }
  0x59   : > { %1098 = vsyncadd (%p1388_p3), %s187_s15, 4294967168  ;;  %v1131_v0 = vmov 0.0|0.0   ;;  %vm1132_vm0 = vmmov 0   ;;  %v1133_v1 = vmov 0.0   ;;  %vm219_vm1 = vcmask 130048   ;;  %v217_v2 = vld [vmem:[%s181_s6] sm:$0xff] }
  0x5a   : > { %889 = vmatprep.subr.bf16.mxu0 %v1131_v0  ;;  %863 = vmatprep.mubr.msk.f32.mxu0 %vm1132_vm0, %v1133_v1  ;;  %v218_v3 = vld [vmem:[%s181_s6 + $0x8] sm:$0xff]  ;;  %v216_v4 = vld [vmem:[%s190_s19] sm:$0xff]  ;;  %v224_v5 = vand.u32 4294901760, %v217_v2  ;;  %s816_s21 = sshll.u32 %s1117_s12, 7  ;;  %s215_s26 = scalar_lea.vmem [#allocation7], %s813_s5 }
  0x5b   : > { %880 = vmatprep.subr.bf16.mxu1 %v1131_v0  ;;  %842 = vmatprep.mubr.msk.f32.mxu1 %vm1132_vm0, %v1133_v1  ;;  %v227_v6 = vand.u32 4294901760, %v218_v3  ;;  %v221_v7 = vsel %vm219_vm1, %v216_v4, 0  ;;  %s698_s30 = sshll.u32 %s215_s26, 4  ;;  %s1326_s29 = scalar_lea.hbm %s1377_s2, %s816_s21  ;;  %s1328_s30 = int_to_ptr.vmem [resolvable:$true] %s698_s30 }
  0x5c   : > { %v290_v8 = vand.u32 4294901760, %v221_v7  ;;  %v302_v10 = vsub.f32 %v217_v2, %v224_v5  ;;  %s684_s3 = scalar_lea.sflag [#allocation4], %s1298_s18  ;;  %s1039_s25 = scalar_lea.vmem %s1328_s30, 128 }
  0x5d   : > { %v881_v9 = vpack.c.bf16 %v227_v6, %v224_v5  ;;  %v309_v11 = vsub.f32 %v218_v3, %v227_v6  ;;  %p1040_p8 = scmp.ne.s32.totalorder %s1328_s30, %s1039_s25  ;;  %p1389_p0 = scmp.ne.s32.totalorder %s1382_s22, 0 }
  0x5e   : > { %v291_v12 = vsub.f32 %v221_v7, %v290_v8  ;;  %v303_v13 = vand.u32 4294901760, %v302_v10  ;;  %s1134_s12 = smov [#allocation7]  }
  0x5f   : > { %891 = vmatpush3.bf16.msra.mxu0 %v881_v9  ;;  %882 = vmatpush3.bf16.msra.mxu1 %v881_v9  ;;  %v310_v14 = vand.u32 4294901760, %v309_v11  ;;  %v887_v24 = vpack.c.bf16 %v309_v11, %v302_v10  ;;  %p1041_p11 = pnand %p1040_p8, %p1389_p0  ;;  %s1043_s7 = sshll.u32 %s1134_s12, 4  ;;  %s1044_s7 = int_to_ptr.vmem [resolvable:$false] %s1043_s7 }
  0x60   : > { %v292_v15 = vand.u32 4294901760, %v291_v12  ;;  %883 = vmatprep.subr.bf16.mxu1 %v1131_v0  ;;  %892 = vmatprep.subr.bf16.mxu0 %v1131_v0  ;;  %v304_v16 = vsub.f32 %v302_v10, %v303_v13  ;;  %s1045_s8 = scalar_lea.vmem %s1044_s7, 256  ;;  %p1046_p7 = scmp.lt.s32.totalorder %s1328_s30, %s1044_s7 }
  0x61   : > { %v311_v17 = vsub.f32 %v309_v11, %v310_v14  ;;  %v893_v18 = vpack.c.bf16 %v310_v14, %v303_v13  ;;  %p1042_p4 = pneg %p1041_p11  ;;  %p1047_p10 = scmp.lt.s32.totalorder %s1045_s8, %s1039_s25 }
  0x62   : > { %864 = vmatmul.mubr.f32.vlgmr.msra.gmra.mrb[0].mxu0 %v292_v15  ;;  %v293_v19 = vsub.f32 %v291_v12, %v292_v15  ;;  %v305_v20 = vand.u32 4294901760, %v304_v16 }
  0x63   : > { %v312_v21 = vand.u32 4294901760, %v311_v17  ;;  %894 = vmatpush3.bf16.msra.mxu0 %v893_v18  ;;  %870 = vmatprep.mubr.msk.f32.mxu0 %vm1132_vm0, %v1133_v1  ;;  %p1048_p12 = por %p1047_p10, %p1046_p7 }
  0x64   : > { %v294_v22 = vand.u32 4294901760, %v293_v19  ;;  %895 = vmatprep.subr.bf16.mxu0 %v1131_v0 }
  0x65   : > { %v884_v23 = vpack.c.bf16 %v312_v21, %v305_v20  ;;  %p1049_p9 = pnand %p1048_p12, %p1042_p4 }
  0x66   : > { %843 = vmatmul.mubr.f32.vlgmr.msra.gmra.mrb[0].mxu1 %v294_v22 }
  0x67   : > { %885 = vmatpush3.bf16.msra.mxu1 %v884_v23  ;;  %849 = vmatprep.mubr.msk.f32.mxu1 %vm1132_vm0, %v1133_v1 }
  0x68   : > { %886 = vmatprep.subr.bf16.mxu1 %v1131_v0 }
  0x6a   : > { %871 = vmatmul.mubr.f32.vlgmr.msra.gmra.mrb[0].mxu0 %v290_v8 }
  0x6b   : > { %897 = vmatpush3.bf16.msra.mxu0 %v881_v9  ;;  %877 = vmatprep.mubr.msk.f32.mxu0 %vm1132_vm0, %v1133_v1 }
  0x6e   : > { %850 = vmatmul.mubr.f32.vlgmr.msra.gmra.mrb[0].mxu1 %v290_v8 }
  0x6f   : > { %888 = vmatpush3.bf16.msra.mxu1 %v887_v24  ;;  %856 = vmatprep.mubr.msk.f32.mxu1 %vm1132_vm0, %v1133_v1 }
  0x72   : > { %878 = vmatmul.mubr.f32.vlgmr.msra.gmra.mrb[0].mxu0 %v290_v8 }
  0x76   : > { %857 = vmatmul.mubr.f32.vlgmr.msra.gmra.mrb[0].mxu1 %v291_v12 }
 0x145   : > { %v678_v25 = vpop.f32.mrb[0].mxu0 }
 0x146   : > { %v879_v26 = vpop.f32.mrb[1].mxu0 }
 0x149   : > { %v453_v27 = vpop.f32.mrb[0].mxu1 }
 0x14a   : > { %v898_v28 = vadd.f32 %v678_v25, %v453_v27  ;;  %v858_v29 = vpop.f32.mrb[1].mxu1 }
 0x14c   : > { %682 = vst [vmem:[%s215_s26] sm:$0xff] %v898_v28 }
 0x14d   : > { %1052 = shalt.err (!%p1049_p9)
}
 0x14e   : > { %s1053_s16 = scalar_lea.hbm %s1326_s29, 128  ;;  %s1057_s4 = scalar_lea.hbm %s1377_s2, 256 }
 0x14f   : > { %p1054_p1 = scmp.ne.s32.totalorder %s1326_s29, %s1053_s16  ;;  %p1058_p5 = scmp.lt.u32.totalorder %s1326_s29, %s1377_s2 }
 0x150   : > { %p1059_p13 = scmp.lt.u32.totalorder %s1057_s4, %s1053_s16  ;;  %p1061_p8 = scmp.lt.u32.totalorder %s1053_s16, %s1326_s29 }
 0x151   : > { %p1055_p6 = pnand %p1054_p1, %p1389_p0 }
 0x152   : > { %p1060_p3 = por %p1059_p13, %p1058_p5 }
 0x153   : > { %p1056_p2 = pneg %p1055_p6 }
 0x154   : > { %p1062_p11 = por %p1061_p8, %p1060_p3 }
 0x156   : > { %p1063_p4 = pnand %p1062_p11, %p1056_p2 }
 0x158   : > { %1066 = shalt.err (!%p1063_p4)
}
 0x159   : > { %911 = dma.vmem_to_hbm [thread:$0]  (%p1389_p0), %s1328_s30, 128, %s1326_s29, %s684_s3  }
 0x15a PF: > { %s710_s15 = sand.u32 1, %s1105_s9   ;;  %p1390_p7 = scmp.ne.s32.totalorder %s1383_s24, 0 }
 0x15b   : > { %p1391_p10 = scmp.ge.s32.totalorder %s1125_s14, 2  ;;  %s711_s19 = scalar_lea.sflag [#allocation4], %s710_s15 }
 0x15d   : > { %p921_p12 = pnand %p1391_p10, %p1390_p7 }
 0x15f   : > { %1100 = dma.done.wait (!%p921_p12), %s711_s19, 128  }
 0x160   : > { %1102 = vsyncadd (!%p921_p12), %s711_s19, 4294967168  ;;  %s21_s14 = sadd.s32 1, %s1125_s14   ;;  %s1392_s9 = smov %s1109_s10 }
 0x161   : > { %p18_p9 = scmp.ge.s32.totalorder %s21_s14, 4   ;;  %s1393_s10 = smov %s1113_s11 }
 0x162   : > { %s1394_s11 = smov %s1206_s23  ;;  %s1395_s12 = smov %s1121_s13 }
 0x163   : > { %s1396_s13 = smov %s1398_s17  ;;  %20 = sbr.rel (!%p18_p9) target bundleno = 8 (0x8), region = 86 }
 0x16a   :  { %716 = vsyncpa [#allocation3], 1 }
 0x16b   :  { %718 = vsyncpa [#allocation3 + $0x1], 1 }
 0x16c   :  { %719 = vsyncpa [#allocation6], 1 }
 0x16d   :  { %721 = vsyncpa [#allocation6 + $0x1], 1 }
 0x16e   :  { %722 = vsyncpa [#allocation4], 1 }
 0x16f   :  { %724 = vsyncpa [#allocation4 + $0x1], 1 }

</bundles_post_ra>
